<compile_context>
chip_gen: v7x
topology: tpu7x:2x2x1
jax: 0.10.0
libtpu: 0.0.40
codegen_flags: <defaults>
</compile_context>

<pallas_src>
import jax
import jax.numpy as jnp
from jax.experimental import pallas as pl
from jax.experimental.pallas import tpu as pltpu


def _net_kernel(x_ref, w1_ref, b1_ref, w2_ref, b2_ref, out_ref):
    # x_ref  : (1, TN)  f32   batch tile on lanes (streamed)
    # w1_ref : (H, 1)   f32   fc1.weight (as a column), resident in VMEM
    # b1_ref : (H, 1)   f32   fc1.bias,                resident in VMEM
    # w2_ref : (H, O)   f32   fc4.weight (transposed), resident in VMEM
    # b2_ref : (O,)     f32   fc4.bias, SMEM scalars
    # out_ref: (O, TN)  f32   lane-dense output tile
    x = x_ref[...]                                        # (1, TN)
    # fc1 + sigmoid: K=1 contraction done as a VPU broadcast outer product,
    # sigmoid goes to the EUP slot.
    h = jax.nn.sigmoid(w1_ref[...] * x + b1_ref[...])     # (H, TN)
    w2 = w2_ref[...]                                      # (H, O)
    o_dim = out_ref.shape[0]
    # fc4: elementwise multiply + sublane (H) reduce on the XLU; O is tiny and
    # static so the Python loop fully unrolls.
    cols = [
        jnp.sum(h * w2[:, o:o + 1], axis=0, keepdims=True) + b2_ref[o]
        for o in range(o_dim)
    ]
    out_ref[...] = jnp.concatenate(cols, axis=0).astype(out_ref.dtype)


def net_forward(x, w1, b1, w2, b2, *, tile_n=1024):
    """Forward pass of Net.

    x : (N, 1); w1: (1, H) (= fc1.weight.T); b1: (H,);
    w2: (H, O) (= fc4.weight.T); b2: (O,)  ->  (N, O) float32.
    """
    n = x.shape[0]
    h_dim = w1.shape[1]
    o_dim = w2.shape[1]

    # Lane tile: multiple of 128, no larger than needed for small N.
    tn = min(tile_n, ((n + 127) // 128) * 128)
    n_pad = pl.cdiv(n, tn) * tn

    # Transposed / zero-padded operands: batch on the last (lane) axis.
    x_t = jnp.zeros((1, n_pad), jnp.float32).at[0, :n].set(
        x[:, 0].astype(jnp.float32))
    w1_c = w1.reshape(h_dim, 1).astype(jnp.float32)      # (H, 1)
    b1_c = b1.reshape(h_dim, 1).astype(jnp.float32)      # (H, 1)
    w2_c = w2.astype(jnp.float32)                        # (H, O)
    b2_c = b2.reshape(o_dim).astype(jnp.float32)         # (O,) -> SMEM scalars

    out_t = pl.pallas_call(
        _net_kernel,
        out_shape=jax.ShapeDtypeStruct((o_dim, n_pad), jnp.float32),
        grid=(n_pad // tn,),
        in_specs=[
            pl.BlockSpec((1, tn), lambda i: (0, i)),            # x tile (streamed)
            pl.BlockSpec((h_dim, 1), lambda i: (0, 0)),         # w1 (resident)
            pl.BlockSpec((h_dim, 1), lambda i: (0, 0)),         # b1 (resident)
            pl.BlockSpec((h_dim, o_dim), lambda i: (0, 0)),     # w2 (resident)
            pl.BlockSpec(memory_space=pltpu.MemorySpace.SMEM),  # b2 scalars
        ],
        out_specs=pl.BlockSpec((o_dim, tn), lambda i: (0, i)),
        compiler_params=pltpu.CompilerParams(
            # batch tiles are independent -> shard across v7x's 2 TensorCores
            dimension_semantics=("parallel",),
        ),
    )(x_t, w1_c, b1_c, w2_c, b2_c)

    # Back to the module's (N, O) layout; drop the padded lanes.
    return out_t[:, :n].T


if __name__ == "__main__":
    # Small, deterministic configuration consistent with Net(n_hidden, output_size).
    batch = 8
    n_hidden = 32
    output_size = 1

    key = jax.random.PRNGKey(0)
    k_x, k_w1, k_b1, k_w2, k_b2 = jax.random.split(key, 5)

    x = jax.random.normal(k_x, (batch, 1), dtype=jnp.float32)
    w1 = jax.random.normal(k_w1, (1, n_hidden), dtype=jnp.float32) * 0.5    # fc1.weight^T
    b1 = jax.random.normal(k_b1, (n_hidden,), dtype=jnp.float32) * 0.1      # fc1.bias
    w2 = jax.random.normal(k_w2, (n_hidden, output_size), dtype=jnp.float32) * 0.5  # fc4.weight^T
    b2 = jax.random.normal(k_b2, (output_size,), dtype=jnp.float32) * 0.1   # fc4.bias

    out = jax.block_until_ready(net_forward(x, w1, b1, w2, b2))
    ref = jax.nn.sigmoid(x @ w1 + b1) @ w2 + b2
    assert out.shape == (batch, output_size)
    assert jnp.allclose(out, ref, atol=1e-5, rtol=1e-5)

    # Second check: batch not divisible by the tile -> exercises a multi-step
    # grid (3 tiles of 128 lanes) and the final-tile zero-padding path.
    x2 = jax.random.normal(jax.random.PRNGKey(1), (300, 1), dtype=jnp.float32)
    out2 = jax.block_until_ready(net_forward(x2, w1, b1, w2, b2, tile_n=128))
    ref2 = jax.nn.sigmoid(x2 @ w1 + b1) @ w2 + b2
    assert out2.shape == (300, output_size)
    assert jnp.allclose(out2, ref2, atol=1e-5, rtol=1e-5)

    print("KERNEL_OK")
</pallas_src>

<mosaic_0001>
module attributes {stable_mosaic.version = 11 : i64} {
  func.func @_net_kernel(%arg0: i32, %arg1: memref<1x128xf32, #tpu.memory_space<vmem>>, %arg2: memref<32x1xf32, #tpu.memory_space<vmem>>, %arg3: memref<32x1xf32, #tpu.memory_space<vmem>>, %arg4: memref<32x1xf32, #tpu.memory_space<vmem>>, %arg5: memref<1xf32, #tpu.memory_space<smem>>, %arg6: memref<1x128xf32, #tpu.memory_space<vmem>>) attributes {dimension_semantics = [#tpu.dimension_semantics<parallel>], iteration_bounds = array<i64: 1>, scalar_prefetch = 0 : i64, scratch_operands = 0 : i64, tpu.core_type = #tpu.core_type<tc>, window_params = [{transform_indices = @transform_0, window_bounds = array<i64: 1, 128>}, {pipeline_mode = #tpu.pipeline_mode<synchronous>, transform_indices = @transform_1, window_bounds = array<i64: 32, 1>}, {pipeline_mode = #tpu.pipeline_mode<synchronous>, transform_indices = @transform_2, window_bounds = array<i64: 32, 1>}, {pipeline_mode = #tpu.pipeline_mode<synchronous>, transform_indices = @transform_3, window_bounds = array<i64: 32, 1>}, {transform_indices = @transform_4, window_bounds = array<i64: 1>}, {transform_indices = @transform_5, window_bounds = array<i64: 1, 128>}]} {
    %c0 = arith.constant 0 : index
    %c0_0 = arith.constant 0 : index
    %0 = vector.load %arg1[%c0, %c0_0] : memref<1x128xf32, #tpu.memory_space<vmem>>, vector<1x128xf32>
    %c0_1 = arith.constant 0 : index
    %c0_2 = arith.constant 0 : index
    %1 = vector.load %arg2[%c0_1, %c0_2] : memref<32x1xf32, #tpu.memory_space<vmem>>, vector<32x1xf32>
    %2 = vector.broadcast %1 : vector<32x1xf32> to vector<32x128xf32>
    %3 = vector.broadcast %0 : vector<1x128xf32> to vector<32x128xf32>
    %4 = arith.mulf %2, %3 : vector<32x128xf32>
    %c0_3 = arith.constant 0 : index
    %c0_4 = arith.constant 0 : index
    %5 = vector.load %arg3[%c0_3, %c0_4] : memref<32x1xf32, #tpu.memory_space<vmem>>, vector<32x1xf32>
    %6 = vector.broadcast %5 : vector<32x1xf32> to vector<32x128xf32>
    %7 = arith.addf %4, %6 : vector<32x128xf32>
    %8 = arith.negf %7 : vector<32x128xf32>
    %9 = math.exp %8 : vector<32x128xf32>
    %cst = arith.constant 1.000000e+00 : f32
    %10 = vector.broadcast %cst : f32 to vector<32x128xf32>
    %11 = arith.addf %10, %9 : vector<32x128xf32>
    %12 = arith.divf %10, %11 : vector<32x128xf32>
    %c0_5 = arith.constant 0 : index
    %c0_6 = arith.constant 0 : index
    %13 = vector.load %arg4[%c0_5, %c0_6] : memref<32x1xf32, #tpu.memory_space<vmem>>, vector<32x1xf32>
    %14 = vector.broadcast %13 : vector<32x1xf32> to vector<32x128xf32>
    %15 = arith.mulf %12, %14 : vector<32x128xf32>
    %cst_7 = arith.constant dense<0.000000e+00> : vector<128xf32>
    %16 = vector.multi_reduction <add>, %15, %cst_7 [0] : vector<32x128xf32> to vector<128xf32>
    %17 = vector.shape_cast %16 : vector<128xf32> to vector<1x128xf32>
    %c0_8 = arith.constant 0 : index
    %18 = memref.load %arg5[%c0_8] : memref<1xf32, #tpu.memory_space<smem>>
    %19 = vector.broadcast %18 : f32 to vector<1x128xf32>
    %20 = arith.addf %17, %19 : vector<1x128xf32>
    %c0_9 = arith.constant 0 : index
    %c0_10 = arith.constant 0 : index
    %21 = vector.load %arg6[%c0_9, %c0_10] : memref<1x128xf32, #tpu.memory_space<vmem>>, vector<1x128xf32>
    tpu.vector_store %arg6[%c0_9, %c0_10], %20 {strides = array<i32>} : memref<1x128xf32, #tpu.memory_space<vmem>>, vector<1x128xf32>,
    return
  }
  func.func @transform_0(%arg0: i32) -> (i32, i32) {
    %c0_i32 = arith.constant 0 : i32
    %c0_i32_0 = arith.constant 0 : i32
    return %c0_i32, %arg0 : i32, i32
  }
  func.func @transform_1(%arg0: i32) -> (i32, i32) {
    %c0_i32 = arith.constant 0 : i32
    %c0_i32_0 = arith.constant 0 : i32
    %c0_i32_1 = arith.constant 0 : i32
    return %c0_i32, %c0_i32_0 : i32, i32
  }
  func.func @transform_2(%arg0: i32) -> (i32, i32) {
    %c0_i32 = arith.constant 0 : i32
    %c0_i32_0 = arith.constant 0 : i32
    %c0_i32_1 = arith.constant 0 : i32
    return %c0_i32, %c0_i32_0 : i32, i32
  }
  func.func @transform_3(%arg0: i32) -> (i32, i32) {
    %c0_i32 = arith.constant 0 : i32
    %c0_i32_0 = arith.constant 0 : i32
    %c0_i32_1 = arith.constant 0 : i32
    return %c0_i32, %c0_i32_0 : i32, i32
  }
  func.func @transform_4(%arg0: i32) -> i32 {
    %c0_i32 = arith.constant 0 : i32
    %c0_i32_0 = arith.constant 0 : i32
    return %c0_i32 : i32
  }
  func.func @transform_5(%arg0: i32) -> (i32, i32) {
    %c0_i32 = arith.constant 0 : i32
    %c0_i32_0 = arith.constant 0 : i32
    return %c0_i32, %arg0 : i32, i32
  }
}

</mosaic_0001>

<bundles_post_ra>
// kernel: tpu_custom_call.1
= control target key start
LH: loop header
LB: loop body
LE: loop exit
PB: predicated region body
PF: predicated region fallthrough
CT: control target
= control target key end

     0   :  { %v213_v2 = vmov 0   ;;  %s299_s0 = inlined_call_operand.vmem [shape: f32[1,128], index: 0, kind: input, shape index: {}]   ;;  %s300_s1 = inlined_call_operand.vmem [shape: f32[32,1], index: 1, kind: input, shape index: {}]   ;;  %s301_s2 = inlined_call_operand.vmem [shape: f32[32,1], index: 2, kind: input, shape index: {}]   ;;  %s302_s3 = inlined_call_operand.vmem [shape: f32[32,1], index: 3, kind: input, shape index: {}]   ;;  %s303_s4 = inlined_call_operand.<no memory space> [shape: f32[1], index: 4, kind: input, shape index: {}]   ;;  %s304_s5 = inlined_call_operand.hbm [shape: f32[1,128], index: 5, kind: output, shape index: {}]  }
   0x1   :  { %v25_v0 = vld [vmem:[%s300_s1 + $0x10] sm:$0xff]  ;;  %v23_v1 = vld [vmem:[%s300_s1] sm:$0xff]  ;;  %172 = vset.pattern.permute.xlu1 %v213_v2  ;;  %171 = vset.pattern.permute.xlu0 %v213_v2  ;;  %v24_v4 = vld [vmem:[%s300_s1 + $0x8] sm:$0xff] }
   0x2   :  { %39 = vperm.xlu1 %172, %v25_v0   ;;  %29 = vperm.xlu0 %171, %v23_v1   ;;  %v57_v3 = vld [vmem:[%s301_s2] sm:$0xff] }
   0x3   :  { %11 = vsyncpa [#allocation4], 0  ;;  %v26_v5 = vld [vmem:[%s300_s1 + $0x18] sm:$0xff]  ;;  %v58_v6 = vld [vmem:[%s301_s2 + $0x8] sm:$0xff]  ;;  %v147_v62 = vstv %s303_s4  ;;  %s214_s17 = smov [#allocation3]  }
   0x4   :  { %v60_v7 = vld [vmem:[%s301_s2 + $0x18] sm:$0xff]  ;;  %v59_v8 = vld [vmem:[%s301_s2 + $0x10] sm:$0xff]  ;;  %v110_v9 = vld [vmem:[%s302_s3 + $0x8] sm:$0xff]  ;;  %s156_s18 = sshll.u32 %s214_s17, 4  ;;  %s157_s18 = int_to_ptr.vmem [resolvable:$true] %s156_s18 }
   0x5   :  { %v109_v10 = vld [vmem:[%s302_s3] sm:$0xff]  ;;  %v112_v11 = vld [vmem:[%s302_s3 + $0x18] sm:$0xff]  ;;  %v111_v12 = vld [vmem:[%s302_s3 + $0x10] sm:$0xff]  ;;  %s189_s19 = scalar_lea.vmem %s157_s18, 16  ;;  %s193_s20 = scalar_lea.vmem %s157_s18, 32 }
   0x6   :  { %63 = vperm.xlu1 %172, %v57_v3   ;;  %34 = vperm.xlu0 %171, %v24_v4   ;;  %v164_v14 = vld [vmem:[%s299_s0] ss:$0 sm:$0xff]  ;;  %p190_p0 = scmp.ne.s32.totalorder %s157_s18, %s189_s19  ;;  %p194_p1 = scmp.lt.s32.totalorder %s157_s18, %s157_s18 }
   0x7   :  { %p195_p2 = scmp.lt.s32.totalorder %s193_s20, %s189_s19 }
   0x9   :  { %p196_p3 = por %p195_p2, %p194_p1 }
   0xa   :  { %44 = vperm.xlu1 %172, %v26_v5   ;;  %68 = vperm.xlu0 %171, %v58_v6  }
   0xb   :  { %p197_p4 = pnand %p196_p3, %p190_p0 }
   0xe   :  { %78 = vperm.xlu1 %172, %v60_v7   ;;  %73 = vperm.xlu0 %171, %v59_v8  }
  0x12   :  { %120 = vperm.xlu1 %172, %v110_v9   ;;  %115 = vperm.xlu0 %171, %v109_v10  }
  0x16   :  { %130 = vperm.xlu1 %172, %v112_v11   ;;  %125 = vperm.xlu0 %171, %v111_v12  }
  0x81   :  { %v40_v13 = vpop.permute.xlu1 %39  ;;  %v30_v15 = vpop.permute.xlu0 %29 }
  0x82   :  { %v53_v16 = vmul.f32 %v164_v14, %v30_v15  ;;  %v55_v25 = vmul.f32 %v164_v14, %v40_v13 }
  0x85   :  { %v64_v17 = vpop.permute.xlu1 %63  ;;  %v35_v18 = vpop.permute.xlu0 %34 }
  0x86   :  { %v81_v19 = vadd.f32 %v64_v17, %v53_v16  ;;  %v54_v21 = vmul.f32 %v164_v14, %v35_v18 }
  0x88   :  { %v165_v20 = vmul.f32 -1.442695, %v81_v19 }
  0x89   :  { %v45_v22 = vpop.permute.xlu1 %44  ;;  %v69_v23 = vpop.permute.xlu0 %68 }
  0x8a   :  { %v82_v24 = vadd.f32 %v69_v23, %v54_v21  ;;  %173 = vpow2.f32 %v165_v20  ;;  %v56_v26 = vmul.f32 %v164_v14, %v45_v22 }
  0x8c   :  { %v166_v27 = vmul.f32 -1.442695, %v82_v24 }
  0x8d   :  { %v79_v28 = vpop.permute.xlu1 %78  ;;  %v74_v29 = vpop.permute.xlu0 %73 }
  0x8e   :  { %175 = vpow2.f32 %v166_v27  ;;  %v84_v30 = vadd.f32 %v79_v28, %v56_v26  ;;  %v83_v31 = vadd.f32 %v74_v29, %v55_v25 }
  0x90   :  { %v168_v32 = vmul.f32 -1.442695, %v84_v30  ;;  %v167_v33 = vmul.f32 -1.442695, %v83_v31 }
  0x91   :  { %v116_v42 = vpop.permute.xlu0 %115  ;;  %v121_v45 = vpop.permute.xlu1 %120 }
  0x92   :  { %177 = vpow2.f32 %v168_v32 }
  0x93   :  { %179 = vpow2.f32 %v167_v33 }
  0x94   :  { %v174_v34 = vpop.eup %173 }
  0x95   :  { %v97_v36 = vadd.f32 1.0, %v174_v34  ;;  %v126_v50 = vpop.permute.xlu0 %125  ;;  %v131_v53 = vpop.permute.xlu1 %130 }
  0x98   :  { %v176_v35 = vpop.eup %175 }
  0x99   :  { %v98_v37 = vadd.f32 1.0, %v176_v35 }
  0x9b   :  { %181 = vrcp.f32 %v98_v37 }
  0x9c   :  { %v178_v38 = vpop.eup %177  ;;  %183 = vrcp.f32 %v97_v36 }
  0x9d   :  { %v180_v39 = vpop.eup %179  ;;  %v100_v40 = vadd.f32 1.0, %v178_v38 }
  0x9e   :  { %v99_v41 = vadd.f32 1.0, %v180_v39 }
  0x9f   :  { %185 = vrcp.f32 %v100_v40 }
  0xa0   :  { %187 = vrcp.f32 %v99_v41 }
  0xa5   :  { %v182_v43 = vpop.eup %181 }
  0xa6   :  { %v184_v44 = vpop.eup %183  ;;  %v134_v46 = vmul.f32 %v182_v43, %v121_v45 }
  0xa7   :  { %v133_v48 = vmul.f32 %v184_v44, %v116_v42 }
  0xa9   :  { %v186_v47 = vpop.eup %185  ;;  %v137_v51 = vadd.f32 %v134_v46, %v133_v48 }
  0xaa   :  { %v188_v49 = vpop.eup %187  ;;  %v136_v54 = vmul.f32 %v186_v47, %v131_v53 }
  0xab   :  { %v135_v52 = vmul.f32 %v188_v49, %v126_v50 }
  0xad   :  { %v138_v55 = vadd.f32 %v137_v51, %v135_v52 }
  0xaf   :  { %v139_v56 = vadd.f32 %v138_v55, %v136_v54 }
  0xb1   :  { %v140_v57 = vrot.slane %v139_v56, 4 }
  0xb3   :  { %v141_v58 = vadd.f32 %v140_v57, %v139_v56 }
  0xb5   :  { %v142_v59 = vrot.slane %v141_v58, 2 }
  0xb7   :  { %v143_v60 = vadd.f32 %v142_v59, %v141_v58 }
  0xb9   :  { %v144_v61 = vrot.slane %v143_v60, 1 }
  0xbb   :  { %v145_v63 = vadd.f32 %v144_v61, %v143_v60 }
  0xbd   :  { %v148_v0 = vadd.f32 %v147_v62, %v145_v63 }
  0xbf   :  { %149 = vst [vmem:[#allocation3] sm:$0x1] %v148_v0 }
  0xc0   :  { %200 = shalt.err (!%p197_p4)
}
  0xc1   :  { %s201_s23 = scalar_lea.hbm %s304_s5, 16 }
  0xc2   :  { %p202_p5 = scmp.ne.s32.totalorder %s304_s5, %s201_s23  ;;  %p205_p6 = scmp.lt.u32.totalorder %s201_s23, %s304_s5 }
  0xc4   :  { %p207_p7 = pnand %p205_p6, %p202_p5 }
  0xc6   :  { %210 = shalt.err (!%p207_p7)
}
  0xc7   :  { %159 = dma.vmem_to_hbm [thread:$0]  %s157_s18, 16, %s304_s5, [#allocation4]  }
  0xc8   :  { %211 = dma.done.wait [#allocation4], 16  }
  0xc9   :  { %212 = vsyncadd [#allocation4], 4294967280 }
  0xca   :  { %163 = vsyncpa [#allocation4], 1 }

</bundles_post_ra>
